<compile_context>
chip_gen: v7x
topology: tpu7x:2x2x1
jax: 0.10.0
libtpu: 0.0.40
codegen_flags: <defaults>
</compile_context>

<pallas_src>
import jax
import jax.numpy as jnp
from jax.experimental import pallas as pl
from jax.experimental.pallas import tpu as pltpu

N_ROWS = 2      # batch rows produced by the module
EMB_DIM = 3     # embedding feature dim (so cat(emb, input2) has 4 features)
IN_DIM = 4      # Linear in_features
OUT_DIM = 4     # Linear out_features
IDX = (0, 2)    # static embedding indices hard-coded in the torch forward


def mm_kernel(emb_ref, in2_ref, params_ref, out_ref):
    """emb_ref    : (2, 3) f32  -- emb_table rows [0, 2]
       in2_ref    : (2, 1) f32  -- module-level input2
       params_ref : (5, 4) f32  -- rows 0..3 = W^T, row 4 = bias (packed once at init)
       out_ref    : (2, 4) f32  -- cat(emb, input2) @ W^T + bias
    The concat is never materialized: the contraction is split per input column.
    """
    e = emb_ref[...]                              # (2, 3)
    x = in2_ref[...]                              # (2, 1)
    p = params_ref[...]                           # (5, 4)
    wt = p[0:IN_DIM, :]                           # (4, 4) = W^T
    b = p[IN_DIM:IN_DIM + 1, :]                   # (1, 4) = bias

    # out = a @ W^T + b with a = [e | x], unrolled as broadcast multiplies on
    # the VPU and a 2-level add tree (shorter serial dependency than chaining).
    m0 = e[:, 0:1] * wt[0:1, :]
    m1 = e[:, 1:2] * wt[1:2, :]
    m2 = e[:, 2:3] * wt[2:3, :]
    m3 = x * wt[3:4, :]
    out_ref[...] = (b + (m0 + m1)) + (m2 + m3)


def pack_params(weight, bias):
    """One-time (init) packing of the Linear parameters: [W^T ; bias] -> (5, 4).
    weight is in torch layout [out_features, in_features]."""
    return jnp.concatenate([weight.T, bias.reshape(1, OUT_DIM)], axis=0)


@jax.jit
def mm_forward(emb_table, input2, packed_params):
    """emb_table: (V, 3) f32 (stays in HBM; only 2 rows move);
    input2: (2, 1) f32; packed_params: (5, 4) f32 from pack_params()."""
    # Single tiny gather of the two needed rows (indices are trace-time
    # constants, exactly as in the torch module).
    rows = emb_table[jnp.array(IDX, dtype=jnp.int32), :]          # (2, 3)

    return pl.pallas_call(
        mm_kernel,
        out_shape=jax.ShapeDtypeStruct((N_ROWS, OUT_DIM), jnp.float32),
        in_specs=[
            pl.BlockSpec(memory_space=pltpu.MemorySpace.VMEM),    # emb rows (2,3)
            pl.BlockSpec(memory_space=pltpu.MemorySpace.VMEM),    # input2   (2,1)
            pl.BlockSpec(memory_space=pltpu.MemorySpace.VMEM),    # params   (5,4)
        ],
        out_specs=pl.BlockSpec(memory_space=pltpu.MemorySpace.VMEM),
    )(rows, input2, packed_params)


if __name__ == "__main__":
    key = jax.random.PRNGKey(0)
    k_emb, k_w, k_b = jax.random.split(key, 3)

    # Deterministic synthetic parameters (shapes implied by the module):
    # Embedding.from_pretrained(input_embedding) with emb_dim = 3 so that
    # cat(emb, input2) has 4 features for Linear(4, 4).
    vocab = 10
    emb_table = jax.random.normal(k_emb, (vocab, EMB_DIM), dtype=jnp.float32)
    # Linear(4, 4): torch init U(-1/sqrt(4), 1/sqrt(4)); reproduced deterministically.
    bound = 1.0 / jnp.sqrt(4.0)
    weight = jax.random.uniform(k_w, (OUT_DIM, IN_DIM), jnp.float32, -bound, bound)
    bias = jax.random.uniform(k_b, (OUT_DIM,), jnp.float32, -bound, bound)

    input2 = jnp.array([[7.0], [8.0]], dtype=jnp.float32)   # module-level input2

    # Init-time (hoisted) parameter packing -- not part of the per-call path.
    packed_params = pack_params(weight, bias)

    out = mm_forward(emb_table, input2, packed_params)
    out = jax.block_until_ready(out)

    # Pure-JAX reference (same semantics as the torch forward).
    idxs = jnp.array(IDX, dtype=jnp.int32)
    a_ref = jnp.concatenate([emb_table[idxs], input2], axis=1)
    ref = a_ref @ weight.T + bias
    assert out.shape == (N_ROWS, OUT_DIM) and out.dtype == jnp.float32
    assert jnp.allclose(out, ref, atol=1e-5, rtol=1e-5)

    print("KERNEL_OK")
</pallas_src>

<mosaic_0001>
module attributes {stable_mosaic.version = 11 : i64} {
  func.func @mm_kernel(%arg0: memref<2x3xf32, #tpu.memory_space<vmem>>, %arg1: memref<2x1xf32, #tpu.memory_space<vmem>>, %arg2: memref<5x4xf32, #tpu.memory_space<vmem>>, %arg3: memref<2x4xf32, #tpu.memory_space<vmem>>) attributes {dimension_semantics = [], scalar_prefetch = 0 : i64, scratch_operands = 0 : i64, tpu.core_type = #tpu.core_type<tc>} {
    %c0 = arith.constant 0 : index
    %c0_0 = arith.constant 0 : index
    %0 = vector.load %arg0[%c0, %c0_0] : memref<2x3xf32, #tpu.memory_space<vmem>>, vector<2x3xf32>
    %c0_1 = arith.constant 0 : index
    %c0_2 = arith.constant 0 : index
    %1 = vector.load %arg1[%c0_1, %c0_2] : memref<2x1xf32, #tpu.memory_space<vmem>>, vector<2x1xf32>
    %c0_3 = arith.constant 0 : index
    %c0_4 = arith.constant 0 : index
    %2 = vector.load %arg2[%c0_3, %c0_4] : memref<5x4xf32, #tpu.memory_space<vmem>>, vector<5x4xf32>
    %3 = vector.extract_strided_slice %2 {offsets = [0, 0], sizes = [4, 4], strides = [1, 1]} : vector<5x4xf32> to vector<4x4xf32>
    %4 = vector.extract_strided_slice %2 {offsets = [4, 0], sizes = [1, 4], strides = [1, 1]} : vector<5x4xf32> to vector<1x4xf32>
    %5 = vector.extract_strided_slice %0 {offsets = [0, 0], sizes = [2, 1], strides = [1, 1]} : vector<2x3xf32> to vector<2x1xf32>
    %6 = vector.extract_strided_slice %3 {offsets = [0, 0], sizes = [1, 4], strides = [1, 1]} : vector<4x4xf32> to vector<1x4xf32>
    %7 = vector.broadcast %5 : vector<2x1xf32> to vector<2x4xf32>
    %8 = vector.broadcast %6 : vector<1x4xf32> to vector<2x4xf32>
    %9 = arith.mulf %7, %8 : vector<2x4xf32>
    %10 = vector.extract_strided_slice %0 {offsets = [0, 1], sizes = [2, 1], strides = [1, 1]} : vector<2x3xf32> to vector<2x1xf32>
    %11 = vector.extract_strided_slice %3 {offsets = [1, 0], sizes = [1, 4], strides = [1, 1]} : vector<4x4xf32> to vector<1x4xf32>
    %12 = vector.broadcast %10 : vector<2x1xf32> to vector<2x4xf32>
    %13 = vector.broadcast %11 : vector<1x4xf32> to vector<2x4xf32>
    %14 = arith.mulf %12, %13 : vector<2x4xf32>
    %15 = vector.extract_strided_slice %0 {offsets = [0, 2], sizes = [2, 1], strides = [1, 1]} : vector<2x3xf32> to vector<2x1xf32>
    %16 = vector.extract_strided_slice %3 {offsets = [2, 0], sizes = [1, 4], strides = [1, 1]} : vector<4x4xf32> to vector<1x4xf32>
    %17 = vector.broadcast %15 : vector<2x1xf32> to vector<2x4xf32>
    %18 = vector.broadcast %16 : vector<1x4xf32> to vector<2x4xf32>
    %19 = arith.mulf %17, %18 : vector<2x4xf32>
    %20 = vector.extract_strided_slice %3 {offsets = [3, 0], sizes = [1, 4], strides = [1, 1]} : vector<4x4xf32> to vector<1x4xf32>
    %21 = vector.broadcast %1 : vector<2x1xf32> to vector<2x4xf32>
    %22 = vector.broadcast %20 : vector<1x4xf32> to vector<2x4xf32>
    %23 = arith.mulf %21, %22 : vector<2x4xf32>
    %24 = arith.addf %9, %14 : vector<2x4xf32>
    %25 = vector.broadcast %4 : vector<1x4xf32> to vector<2x4xf32>
    %26 = arith.addf %25, %24 : vector<2x4xf32>
    %27 = arith.addf %19, %23 : vector<2x4xf32>
    %28 = arith.addf %26, %27 : vector<2x4xf32>
    %c0_5 = arith.constant 0 : index
    %c0_6 = arith.constant 0 : index
    %29 = vector.load %arg3[%c0_5, %c0_6] : memref<2x4xf32, #tpu.memory_space<vmem>>, vector<2x4xf32>
    tpu.vector_store %arg3[%c0_5, %c0_6], %28 {strides = array<i32>} : memref<2x4xf32, #tpu.memory_space<vmem>>, vector<2x4xf32>,
    return
  }
}

</mosaic_0001>

<bundles_post_ra>
// kernel: mm_forward.1
= control target key start
LH: loop header
LB: loop body
LE: loop exit
PB: predicated region body
PF: predicated region fallthrough
CT: control target
= control target key end

     0   :  { %v113_v1 = vmov 2   ;;  %v114_v2 = vmov 0   ;;  %s158_s0 = inlined_call_operand.vmem [shape: f32[2,3], index: 0, kind: input, shape index: {}]   ;;  %s159_s1 = inlined_call_operand.vmem [shape: f32[2,1], index: 1, kind: input, shape index: {}]   ;;  %s160_s2 = inlined_call_operand.vmem [shape: f32[5,4], index: 2, kind: input, shape index: {}]   ;;  %s161_s3 = inlined_call_operand.hbm [shape: f32[2,4], index: 3, kind: output, shape index: {}]  }
   0x1   :  { %v15_v0 = vld [vmem:[%s158_s0] sm:$0x3]  ;;  %86 = vset.pattern.permute.xlu1 %v113_v1  ;;  %84 = vset.pattern.permute.xlu0 %v114_v2 }
   0x2   :  { %8 = vsyncpa [#allocation3], 0  ;;  %38 = vperm.xlu1 %86, %v15_v0   ;;  %20 = vperm.xlu0 %84, %v15_v0   ;;  %v16_v3 = vld [vmem:[%s159_s1] sm:$0x3]  ;;  %v115_v4 = vmov 1   ;;  %v23_v5 = vlaneseq  ;;  %s116_s1 = smov [#allocation2]  }
   0x3   :  { %v17_v10 = vld [vmem:[%s160_s2] sm:$0x1f]  ;;  %s72_s17 = sshll.u32 %s116_s1, 4  ;;  %vm64_vm0 = vcmask 25600   ;;  %s73_s17 = int_to_ptr.vmem [resolvable:$true] %s72_s17 }
   0x4   :  { %v24_v6 = vshrl.u32 %v23_v5, 7  ;;  %s89_s2 = scalar_lea.vmem %s73_s17, 32  ;;  %p94_p1 = scmp.lt.s32.totalorder %s73_s17, %s73_s17 }
   0x5   :  { %p90_p0 = scmp.ne.s32.totalorder %s73_s17, %s89_s2  ;;  %p95_p2 = scmp.lt.s32.totalorder %s89_s2, %s89_s2 }
   0x6   :  { %87 = vset.pattern.permute.xlu1 %v114_v2  ;;  %85 = vset.pattern.permute.xlu0 %v115_v4  ;;  %v25_v7 = vsub.s32 0, %v24_v6  ;;  %v53_v8 = vsub.s32 3, %v24_v6  ;;  %v34_v9 = vsub.s32 1, %v24_v6  ;;  %v43_v12 = vsub.s32 2, %v24_v6 }
   0x7   :  { %48 = vperm.xlu1 %87, %v16_v3   ;;  %29 = vperm.xlu0 %85, %v15_v0   ;;  %v59_v17 = vsub.s32 4, %v24_v6  ;;  %p96_p3 = por %p95_p2, %p94_p1 }
   0x8   :  { %v26_v14 = vrot.slane %v17_v10, %v25_v7  ;;  %v54_v15 = vrot.slane %v17_v10, %v53_v8  ;;  %v35_v16 = vrot.slane %v17_v10, %v34_v9  ;;  %v44_v18 = vrot.slane %v17_v10, %v43_v12 }
   0x9   :  { %v60_v23 = vrot.slane %v17_v10, %v59_v17  ;;  %p97_p4 = pnand %p96_p3, %p90_p0 }
   0xb   :  { %88 = vset.pattern.permute.xlu0 %v114_v2 }
  0x81   :  { %v21_v11 = vpop.permute.xlu0 %20  ;;  %v39_v13 = vpop.permute.xlu1 %38 }
  0x82   :  { %v27_v21 = vmul.f32 %v26_v14, %v21_v11  ;;  %v45_v25 = vmul.f32 %v44_v18, %v39_v13 }
  0x86   :  { %v49_v19 = vpop.permute.xlu1 %48  ;;  %v30_v20 = vpop.permute.xlu0 %29 }
  0x87   :  { %v55_v22 = vmul.f32 %v54_v15, %v49_v19  ;;  %v36_v24 = vmul.f32 %v35_v16, %v30_v20 }
  0x89   :  { %v56_v26 = vadd.f32 %v36_v24, %v27_v21  ;;  %v62_v27 = vadd.f32 %v55_v22, %v45_v25 }
  0x8b   :  { %v61_v28 = vadd.f32 %v60_v23, %v56_v26 }
  0x8d   :  { %v63_v29 = vadd.f32 %v62_v27, %v61_v28 }
  0x8f   :  { %65 = vst.msk [vmem:[#allocation2] sm:$0x3] %vm64_vm0, %v63_v29 }
  0x90   :  { %100 = shalt.err (!%p97_p4)
}
  0x91   :  { %s101_s20 = scalar_lea.hbm %s161_s3, 32 }
  0x92   :  { %p102_p5 = scmp.ne.s32.totalorder %s161_s3, %s101_s20  ;;  %p105_p6 = scmp.lt.u32.totalorder %s101_s20, %s161_s3 }
  0x94   :  { %p107_p7 = pnand %p105_p6, %p102_p5 }
  0x96   :  { %110 = shalt.err (!%p107_p7)
}
  0x97   :  { %75 = dma.vmem_to_hbm [thread:$0]  %s73_s17, 32, %s161_s3, [#allocation3]  }
  0x98   :  { %111 = dma.done.wait [#allocation3], 32  }
  0x99   :  { %112 = vsyncadd [#allocation3], 4294967264 }
  0x9a   :  { %79 = vsyncpa [#allocation3], 1 }

</bundles_post_ra>
